<compile_context>
chip_gen: v7x
topology: tpu7x:2x2x1
jax: 0.10.0
libtpu: 0.0.40
codegen_flags: <defaults>
</compile_context>

<pallas_src>
import functools

import jax
import jax.numpy as jnp
from jax import lax
from jax.experimental import pallas as pl
from jax.experimental.pallas import tpu as pltpu


def _dual_infonce_kernel(h1_ref, h2_ref, ancidx_ref, sampidx_ref,
                         rowlog_ref, colsum_ref, *, tau, rho, n, col_chunk):
    """One row tile of h1 against all of (resident, pre-normalized bf16) h2.

    Emits per-row 0.5*log(rowsum) for this tile and the tile's partial column
    sums; both InfoNCE directions are recovered from them in the jnp epilogue.
    """
    i = pl.program_id(0)
    tq = h1_ref.shape[0]               # row-tile size
    np_ = h2_ref.shape[0]              # padded N
    inv_tau = jnp.float32(1.0 / tau)
    rho_f = jnp.float32(rho)

    a = h1_ref[...]                    # (TQ, Dp) bf16, rows already L2-normalized
    anc_idx = ancidx_ref[...]          # (TQ, 1) int32 anchor-template of h1 rows

    row_ids = i * tq + lax.broadcasted_iota(jnp.int32, (tq, 1), 0)   # (TQ, 1)
    row_valid = row_ids < n

    num_chunks = np_ // col_chunk

    def accumulate(c0, rowsum):
        # Column chunk [c0, c0+col_chunk) of the resident normalized h2.
        s = h2_ref[pl.ds(c0, col_chunk), :]                          # (CC, Dp) bf16
        # cosine/tau — bf16 MXU inputs, f32 accumulation (attention-style
        # contraction on the last dim of both operands, no per-step transpose).
        sim = lax.dot_general(a, s, (((1,), (1,)), ((), ())),
                              preferred_element_type=jnp.float32) * inv_tau
        samp_idx = sampidx_ref[:, pl.ds(c0, col_chunk)]              # (1, CC) int32
        col_ids = c0 + lax.broadcasted_iota(jnp.int32, (1, col_chunk), 1)

        same = anc_idx == samp_idx                                   # (TQ, CC)
        is_diag = row_ids == col_ids                                 # (TQ, CC)
        # (pos_mask + neg_mask) collapses to: rho if (same XOR diag) else 1.
        w = jnp.where(same != is_diag, rho_f, jnp.float32(1.0))
        w = jnp.where(jnp.logical_and(row_valid, col_ids < n), w, jnp.float32(0.0))

        # cos <= 1  =>  sim - 1/tau <= 0, exp never overflows for any tau.
        e = jnp.exp(sim - inv_tau) * w                               # (TQ, CC) f32

        colsum_ref[:, :, pl.ds(c0, col_chunk)] = (
            jnp.sum(e, axis=0, keepdims=True)[None])                 # (1, 1, CC)
        return rowsum + jnp.sum(e, axis=1, keepdims=True)            # (TQ, 1)

    rowsum0 = jnp.zeros((tq, 1), jnp.float32)
    if num_chunks == 1:
        rowsum = accumulate(0, rowsum0)
    else:
        rowsum = lax.fori_loop(
            0, num_chunks,
            lambda c, rs: accumulate(pl.multiple_of(c * col_chunk, col_chunk), rs),
            rowsum0)

    # Padded rows contribute exactly 0 to the epilogue sum.
    rowlog_ref[...] = jnp.where(
        row_valid, 0.5 * jnp.log(jnp.where(row_valid, rowsum, 1.0)), 0.0)


def _round_up(x, m):
    return ((x + m - 1) // m) * m


def _row_tile_default():
    # 256 fills the 256-wide MXU on v6e/v7x; keep 128 on v5e (4x128x128 MXU).
    try:
        kind = jax.devices()[0].device_kind.lower()
        if "v5 lite" in kind or "v5e" in kind or "v5litepod" in kind:
            return 128
    except Exception:
        pass
    return 256


def _resident_spec(block_shape):
    """Constant-index resident block; single-buffered where supported."""
    index_map = lambda i: (0,) * len(block_shape)
    try:
        return pl.BlockSpec(block_shape, index_map, pipeline_mode=pl.Buffered(1))
    except Exception:   # older JAX without BlockSpec.pipeline_mode
        return pl.BlockSpec(block_shape, index_map)


@functools.partial(jax.jit, static_argnames=("tau", "reweight_rho"))
def dual_branch_contrast_l2l(h1, h2, anchors, *, tau=0.2, reweight_rho=0.9):
    """Forward of DualBranchContrast_ex(mode='L2L') with anchors reweighting."""
    # TODO(synk): extra_pos_mask / extra_neg_mask path not implemented (upstream
    # add_extra_mask also has a `.bool` bug when extra_neg_mask is provided).
    n, d = h1.shape
    inv_tau = 1.0 / tau

    # ---- exact f32 preprocessing (O(N*D) / O(N*K*D), negligible vs O(N^2*D)) ----
    h1f = h1.astype(jnp.float32)
    h2f = h2.astype(jnp.float32)
    ancf = anchors.astype(jnp.float32)
    h1n = h1f / jnp.maximum(jnp.linalg.norm(h1f, axis=1, keepdims=True), 1e-12)
    h2n = h2f / jnp.maximum(jnp.linalg.norm(h2f, axis=1, keepdims=True), 1e-12)
    diag_cos = jnp.sum(h1n * h2n, axis=1)                              # (N,) f32
    anc_idx = jnp.argmax(h1f @ ancf.T, axis=1).astype(jnp.int32)       # h1 templates
    samp_idx = jnp.argmax(h2f @ ancf.T, axis=1).astype(jnp.int32)      # h2 templates

    # ---- tiling ----------------------------------------------------------------
    dp = _round_up(d, 128)                       # lane axis
    tq = min(_row_tile_default(), _round_up(n, 16))
    np_pad = _round_up(n, tq)
    col_chunk = np_pad                           # single pass over columns
    if np_pad > 2048:                            # bound (TQ, CC) intermediates
        col_chunk = 1024
        np_pad = _round_up(np_pad, col_chunk)
    num_tiles = np_pad // tq

    h1p = jnp.zeros((np_pad, dp), jnp.bfloat16).at[:n, :d].set(h1n.astype(jnp.bfloat16))
    h2p = jnp.zeros((np_pad, dp), jnp.bfloat16).at[:n, :d].set(h2n.astype(jnp.bfloat16))
    ancidx_p = jnp.full((np_pad, 1), -1, jnp.int32).at[:n, 0].set(anc_idx)
    sampidx_p = jnp.full((1, np_pad), -1, jnp.int32).at[0, :n].set(samp_idx)

    # ---- explicit VMEM budget (worst-case double buffering assumed) -------------
    est_vmem = (
        2 * np_pad * dp * 2          # resident normalized h2 (bf16)
        + 2 * tq * dp * 2            # streamed h1 row tile (bf16)
        + 2 * tq * 128 * 4           # streamed anc_idx tile (lane-padded)
        + 2 * 8 * np_pad * 4         # resident samp_idx row (sublane-padded)
        + 2 * tq * 128 * 4           # rowlog output tile (lane-padded)
        + 2 * 8 * np_pad * 4         # colsum output tile (sublane-padded)
        + 10 * tq * col_chunk * 4    # live (TQ, CC) f32 intermediates
    )
    vmem_limit = int(min(128 * 1024 * 1024,
                         max(32 * 1024 * 1024, est_vmem + (4 << 20))))
    # TODO(synk): if the resident bf16 h2 alone exceeds v7x's 64 MiB VMEM
    # (N*D > ~32M), switch to a column-streamed h2 layout instead.

    kernel = functools.partial(_dual_infonce_kernel, tau=float(tau),
                               rho=float(reweight_rho), n=n, col_chunk=col_chunk)

    cost = pl.CostEstimate(
        flops=2 * np_pad * np_pad * dp,
        transcendentals=np_pad * np_pad,
        bytes_accessed=(2 * np_pad * dp) * 2 + np_pad * 8
        + np_pad * 4 + num_tiles * np_pad * 4,
    )

    rowlog, colsum_parts = pl.pallas_call(
        kernel,
        out_shape=(
            jax.ShapeDtypeStruct((np_pad, 1), jnp.float32),            # 0.5*log(rowsum)
            jax.ShapeDtypeStruct((num_tiles, 1, np_pad), jnp.float32),  # colsum partials
        ),
        grid_spec=pltpu.PrefetchScalarGridSpec(
            num_scalar_prefetch=0,
            grid=(num_tiles,),
            in_specs=[
                pl.BlockSpec((tq, dp), lambda i: (i, 0)),     # h1_n row tile (streamed)
                _resident_spec((np_pad, dp)),                 # h2_n bf16 (resident)
                pl.BlockSpec((tq, 1), lambda i: (i, 0)),      # h1 template ids (streamed)
                _resident_spec((1, np_pad)),                  # h2 template ids (resident)
            ],
            out_specs=[
                pl.BlockSpec((tq, 1), lambda i: (i, 0)),
                pl.BlockSpec((1, 1, np_pad), lambda i: (i, 0, 0)),
            ],
        ),
        compiler_params=pltpu.CompilerParams(
            # every row tile is independent (partial outputs + jnp epilogue),
            # so the axis is parallel and v7x megacore can split it.
            dimension_semantics=("parallel",),
            vmem_limit_bytes=vmem_limit,
        ),
        cost_estimate=cost,
    )(h1p, h2p, ancidx_p, sampidx_p)

    # ---- tiny epilogue: combine the two InfoNCE directions ----------------------
    cs = jnp.sum(colsum_parts[:, 0, :], axis=0)[:n]          # (N,) column sums of e
    row_term = jnp.sum(rowlog)                               # sum_i 0.5*log(rowsum_i)
    col_term = 0.5 * jnp.sum(jnp.log(cs))                    # sum_j 0.5*log(colsum_j)
    diag_term = jnp.sum(diag_cos) * inv_tau                  # exact f32 positive pairs
    return (row_term + col_term - diag_term) / n + inv_tau


def _reference_loss(h1, h2, anchors, tau=0.2, rho=0.9):
    """Pure-JAX reference mirroring the torch module (two explicit directions)."""
    def one_dir(anchor, sample):
        nn = anchor.shape[0]
        eye = jnp.eye(nn, dtype=jnp.float32)
        pos, neg = eye, 1.0 - eye
        anc_t = jnp.argmax(anchor @ anchors.T, axis=-1)
        samp_t = jnp.argmax(sample @ anchors.T, axis=-1)
        same = anc_t[:, None] == samp_t[None, :]
        neg = jnp.where(same, neg * rho, neg)
        pos = jnp.where(same, pos, pos * rho)
        a_n = anchor / jnp.maximum(jnp.linalg.norm(anchor, axis=1, keepdims=True), 1e-12)
        s_n = sample / jnp.maximum(jnp.linalg.norm(sample, axis=1, keepdims=True), 1e-12)
        sim = (a_n @ s_n.T) / tau
        exp_sim = jnp.exp(sim) * (pos + neg)
        log_prob = sim - jnp.log(jnp.sum(exp_sim, axis=1, keepdims=True))
        row = jnp.sum(log_prob * pos, axis=1) / jnp.sum(pos, axis=1)
        return -jnp.mean(row)
    return 0.5 * (one_dir(h1, h2) + one_dir(h2, h1))


if __name__ == "__main__":
    key = jax.random.PRNGKey(0)
    k1, k2, k3 = jax.random.split(key, 3)

    N, D, K = 8, 32, 4               # nodes, hidden dim, number of cluster anchors
    h1 = jax.random.normal(k1, (N, D), dtype=jnp.float32)
    h2 = jax.random.normal(k2, (N, D), dtype=jnp.float32)
    anchors = jax.random.normal(k3, (K, D), dtype=jnp.float32)

    loss = dual_branch_contrast_l2l(h1, h2, anchors, tau=0.2, reweight_rho=0.9)
    loss = jax.block_until_ready(loss)

    ref = jax.block_until_ready(_reference_loss(h1, h2, anchors, tau=0.2, rho=0.9))

    assert loss.shape == () and bool(jnp.isfinite(loss))
    # bf16 MXU inputs for the (N,N) similarity => small difference vs. f32 reference
    # (diagonal / argmax / normalization are exact f32 now).
    assert abs(float(loss) - float(ref)) < 5e-2, (float(loss), float(ref))
    print("KERNEL_OK")
</pallas_src>

<mosaic_0001>
module attributes {stable_mosaic.version = 11 : i64} {
  func.func @_dual_infonce_kernel(%arg0: i32, %arg1: memref<16x128xbf16, #tpu.memory_space<vmem>>, %arg2: memref<16x128xbf16, #tpu.memory_space<vmem>>, %arg3: memref<16x1xi32, #tpu.memory_space<vmem>>, %arg4: memref<1x16xi32, #tpu.memory_space<vmem>>, %arg5: memref<16x1xf32, #tpu.memory_space<vmem>>, %arg6: memref<1x1x16xf32, #tpu.memory_space<vmem>>) attributes {dimension_semantics = [#tpu.dimension_semantics<parallel>], iteration_bounds = array<i64: 1>, scalar_prefetch = 0 : i64, scratch_operands = 0 : i64, tpu.core_type = #tpu.core_type<tc>, window_params = [{transform_indices = @transform_0, window_bounds = array<i64: 16, 128>}, {pipeline_mode = #tpu.pipeline_mode<synchronous>, transform_indices = @transform_1, window_bounds = array<i64: 16, 128>}, {transform_indices = @transform_2, window_bounds = array<i64: 16, 1>}, {pipeline_mode = #tpu.pipeline_mode<synchronous>, transform_indices = @transform_3, window_bounds = array<i64: 1, 16>}, {transform_indices = @transform_4, window_bounds = array<i64: 16, 1>}, {transform_indices = @transform_5, window_bounds = array<i64: 1, 1, 16>}]} {
    %c0 = arith.constant 0 : index
    %c0_0 = arith.constant 0 : index
    %0 = vector.load %arg1[%c0, %c0_0] : memref<16x128xbf16, #tpu.memory_space<vmem>>, vector<16x128xbf16>
    %c0_1 = arith.constant 0 : index
    %c0_2 = arith.constant 0 : index
    %1 = vector.load %arg3[%c0_1, %c0_2] : memref<16x1xi32, #tpu.memory_space<vmem>>, vector<16x1xi32>
    %c16_i32 = arith.constant 16 : i32
    %2 = arith.muli %arg0, %c16_i32 : i32
    %3 = tpu.iota {dimensions = array<i32: 0>} : vector<16x1xi32>
    %4 = vector.broadcast %2 : i32 to vector<16x1xi32>
    %5 = arith.addi %4, %3 : vector<16x1xi32>
    %c8_i32 = arith.constant 8 : i32
    %6 = vector.broadcast %c8_i32 : i32 to vector<16x1xi32>
    %7 = arith.cmpi slt, %5, %6 : vector<16x1xi32>
    %cst = arith.constant 0.000000e+00 : f32
    %8 = vector.broadcast %cst : f32 to vector<16x1xf32>
    %c0_3 = arith.constant 0 : index
    %c0_4 = arith.constant 0 : index
    %9 = vector.load %arg2[%c0_3, %c0_4] : memref<16x128xbf16, #tpu.memory_space<vmem>>, vector<16x128xbf16>
    %cst_5 = arith.constant dense<0.000000e+00> : vector<16x16xf32>
    %10 = tpu.matmul %0, %9, %cst_5 {dimension_numbers = #tpu.dot_dimension_numbers<[1], [1], [0], [0], [0, 0, 1, 0], [], []>} : vector<16x128xbf16>, vector<16x128xbf16>, vector<16x16xf32> -> vector<16x16xf32>
    %cst_6 = arith.constant 5.000000e+00 : f32
    %11 = vector.broadcast %cst_6 : f32 to vector<16x16xf32>
    %12 = arith.mulf %10, %11 : vector<16x16xf32>
    %c0_7 = arith.constant 0 : index
    %c0_8 = arith.constant 0 : index
    %13 = vector.load %arg4[%c0_7, %c0_8] : memref<1x16xi32, #tpu.memory_space<vmem>>, vector<1x16xi32>
    %14 = tpu.iota {dimensions = array<i32: 1>} : vector<1x16xi32>
    %c0_i32 = arith.constant 0 : i32
    %15 = vector.broadcast %c0_i32 : i32 to vector<1x16xi32>
    %16 = arith.addi %15, %14 : vector<1x16xi32>
    %17 = vector.broadcast %1 : vector<16x1xi32> to vector<16x16xi32>
    %18 = vector.broadcast %13 : vector<1x16xi32> to vector<16x16xi32>
    %19 = arith.cmpi eq, %17, %18 : vector<16x16xi32>
    %20 = vector.broadcast %5 : vector<16x1xi32> to vector<16x16xi32>
    %21 = vector.broadcast %16 : vector<1x16xi32> to vector<16x16xi32>
    %22 = arith.cmpi eq, %20, %21 : vector<16x16xi32>
    %23 = arith.xori %19, %22 : vector<16x16xi1>
    %cst_9 = arith.constant 0.899999976 : f32
    %cst_10 = arith.constant 1.000000e+00 : f32
    %24 = vector.broadcast %cst_9 : f32 to vector<16x16xf32>
    %25 = vector.broadcast %cst_10 : f32 to vector<16x16xf32>
    %26 = arith.select %23, %24, %25 : vector<16x16xi1>, vector<16x16xf32>
    %c8_i32_11 = arith.constant 8 : i32
    %27 = vector.broadcast %c8_i32_11 : i32 to vector<1x16xi32>
    %28 = arith.cmpi slt, %16, %27 : vector<1x16xi32>
    %29 = vector.broadcast %7 : vector<16x1xi1> to vector<16x16xi1>
    %30 = vector.broadcast %28 : vector<1x16xi1> to vector<16x16xi1>
    %31 = arith.andi %29, %30 : vector<16x16xi1>
    %cst_12 = arith.constant 0.000000e+00 : f32
    %32 = vector.broadcast %cst_12 : f32 to vector<16x16xf32>
    %33 = arith.select %31, %26, %32 : vector<16x16xi1>, vector<16x16xf32>
    %cst_13 = arith.constant 5.000000e+00 : f32
    %34 = vector.broadcast %cst_13 : f32 to vector<16x16xf32>
    %35 = arith.subf %12, %34 : vector<16x16xf32>
    %36 = math.exp %35 : vector<16x16xf32>
    %37 = arith.mulf %36, %33 : vector<16x16xf32>
    %cst_14 = arith.constant dense<0.000000e+00> : vector<16xf32>
    %38 = vector.multi_reduction <add>, %37, %cst_14 [0] : vector<16x16xf32> to vector<16xf32>
    %39 = vector.shape_cast %38 : vector<16xf32> to vector<1x16xf32>
    %40 = vector.shape_cast %39 : vector<1x16xf32> to vector<1x1x16xf32>
    %c0_15 = arith.constant 0 : index
    %c0_16 = arith.constant 0 : index
    %c0_17 = arith.constant 0 : index
    %41 = vector.load %arg6[%c0_15, %c0_16, %c0_17] : memref<1x1x16xf32, #tpu.memory_space<vmem>>, vector<1x1x16xf32>
    tpu.vector_store %arg6[%c0_15, %c0_16, %c0_17], %40 {strides = array<i32>} : memref<1x1x16xf32, #tpu.memory_space<vmem>>, vector<1x1x16xf32>,
    %cst_18 = arith.constant dense<0.000000e+00> : vector<16xf32>
    %42 = vector.multi_reduction <add>, %37, %cst_18 [1] : vector<16x16xf32> to vector<16xf32>
    %43 = vector.shape_cast %42 : vector<16xf32> to vector<16x1xf32>
    %44 = arith.addf %8, %43 : vector<16x1xf32>
    %cst_19 = arith.constant 1.000000e+00 : f32
    %45 = vector.broadcast %cst_19 : f32 to vector<16x1xf32>
    %46 = arith.select %7, %44, %45 : vector<16x1xi1>, vector<16x1xf32>
    %47 = math.log %46 : vector<16x1xf32>
    %cst_20 = arith.constant 5.000000e-01 : f32
    %48 = vector.broadcast %cst_20 : f32 to vector<16x1xf32>
    %49 = arith.mulf %48, %47 : vector<16x1xf32>
    %cst_21 = arith.constant 0.000000e+00 : f32
    %50 = vector.broadcast %cst_21 : f32 to vector<16x1xf32>
    %51 = arith.select %7, %49, %50 : vector<16x1xi1>, vector<16x1xf32>
    %c0_22 = arith.constant 0 : index
    %c0_23 = arith.constant 0 : index
    %52 = vector.load %arg5[%c0_22, %c0_23] : memref<16x1xf32, #tpu.memory_space<vmem>>, vector<16x1xf32>
    tpu.vector_store %arg5[%c0_22, %c0_23], %51 {strides = array<i32>} : memref<16x1xf32, #tpu.memory_space<vmem>>, vector<16x1xf32>,
    return
  }
  func.func @transform_0(%arg0: i32) -> (i32, i32) {
    %c0_i32 = arith.constant 0 : i32
    %c0_i32_0 = arith.constant 0 : i32
    return %arg0, %c0_i32 : i32, i32
  }
  func.func @transform_1(%arg0: i32) -> (i32, i32) {
    %c0_i32 = arith.constant 0 : i32
    %c0_i32_0 = arith.constant 0 : i32
    %c0_i32_1 = arith.constant 0 : i32
    return %c0_i32, %c0_i32_0 : i32, i32
  }
  func.func @transform_2(%arg0: i32) -> (i32, i32) {
    %c0_i32 = arith.constant 0 : i32
    %c0_i32_0 = arith.constant 0 : i32
    return %arg0, %c0_i32 : i32, i32
  }
  func.func @transform_3(%arg0: i32) -> (i32, i32) {
    %c0_i32 = arith.constant 0 : i32
    %c0_i32_0 = arith.constant 0 : i32
    %c0_i32_1 = arith.constant 0 : i32
    return %c0_i32, %c0_i32_0 : i32, i32
  }
  func.func @transform_4(%arg0: i32) -> (i32, i32) {
    %c0_i32 = arith.constant 0 : i32
    %c0_i32_0 = arith.constant 0 : i32
    return %arg0, %c0_i32 : i32, i32
  }
  func.func @transform_5(%arg0: i32) -> (i32, i32, i32) {
    %c0_i32 = arith.constant 0 : i32
    %c0_i32_0 = arith.constant 0 : i32
    %c0_i32_1 = arith.constant 0 : i32
    return %arg0, %c0_i32, %c0_i32_0 : i32, i32, i32
  }
}

</mosaic_0001>

<bundles_post_ra>
// kernel: dual_branch_contrast_l2l.1
= control target key start
LH: loop header
LB: loop body
LE: loop exit
PB: predicated region body
PF: predicated region fallthrough
CT: control target
= control target key end

     0   :  { %vm158_vm0 = vcmask 7168   ;;  %v195_v0 = vmov 0.0   ;;  %vm196_vm1 = vmmov 0   ;;  %v197_v2 = vmov 0   ;;  %s252_s4 = inlined_call_operand.vmem [shape: f32[16,1], index: 4, kind: output, shape index: {0}]   ;;  %s253_s1 = inlined_call_operand.vmem [shape: bf16[16,128], index: 1, kind: input, shape index: {}]   ;;  %s254_s2 = inlined_call_operand.vmem [shape: s32[16,1], index: 2, kind: input, shape index: {}]   ;;  %s255_s0 = inlined_call_operand.vmem [shape: bf16[16,128], index: 0, kind: input, shape index: {}]   ;;  %s256_s3 = inlined_call_operand.vmem [shape: s32[1,16], index: 3, kind: input, shape index: {}]   ;;  %s257_s5 = inlined_call_operand.vmem [shape: f32[1,1,16], index: 5, kind: output, shape index: {1}]  }
   0x1   :  { %176 = vmatprep.subr.bf16.mxu0 %v195_v0  ;;  %160 = vst.msk [vmem:[%s252_s4 + $0x8] sm:$0xff] %vm158_vm0, %v195_v0  ;;  %v187_v1 = vld [vmem:[%s253_s1] sm:$0xff]   ;;  %178 = vmatprep.mubr.msk.bf16.mxu0 %vm196_vm1, %v195_v0  ;;  %v25_v5 = vlaneseq  ;;  %v198_v20 = vmov 1.0   ;;  %vm130_vm6 = vcmask 130048   ;;  %vm140_vm7 = vcmask 122880  }
   0x2   :  { %186 = vset.pattern.permute.xlu0 %v197_v2  ;;  %177 = vmatpush3.bf16.xpose.msra.mxu0 %v187_v1  ;;  %v22_v3 = vld [vmem:[%s254_s2] sm:$0xff] }
   0x3   :  { %94 = vperm.xlu0 %186, %v22_v3   ;;  %v188_v4 = vld [vmem:[%s255_s0] sm:$0xff]   ;;  %v26_v10 = vshrl.u32 %v25_v5, 7  ;;  %v92_v11 = vand.u32 127, %v25_v5 }
   0x4   :  { %v171_v15 = vld [vmem:[%s256_s3] ss:$0 sm:$0xff] }
   0x5   :  { %vm105_vm2 = vcmp.eq.s32.totalorder %v26_v10, %v92_v11  ;;  %vm111_vm5 = vcmp.lt.s32.totalorder %v92_v11, 8 }
   0x9   :  { %179 = vmatmul.mubr.bf16.vlgmr.msra.gmra.mrb[0].mxu0 %v188_v4 }
  0x82   :  { %v95_v16 = vpop.permute.xlu0 %94 }
  0x83   :  { %vm103_vm3 = vcmp.eq.s32.totalorder %v95_v16, %v171_v15 }
  0x84   :  { %vm107_vm4 = vmxor %vm103_vm3, %vm105_vm2 }
  0x85   :  { %v109_v21 = vsel %vm107_vm4, 0.9, %v198_v20 }
  0x86   :  { %v120_v22 = vsel %vm111_vm5, %v109_v21, 0.0 }
  0xdc   :  { %v81_v6 = vpop.f32.mrb[0].mxu0 }
  0xdd   :  { %v88_v7 = vmul.f32 5.0, %v81_v6  ;;  %v180_v8 = vpop.f32.mrb[1].mxu0 }
  0xde   :  { %v84_v9 = vpop.f32.mrb[2].mxu0 }
  0xdf   :  { %v172_v12 = vadd.f32 -5.0, %v88_v7  ;;  %v89_v13 = vmul.f32 5.0, %v84_v9  ;;  %v181_v14 = vpop.f32.mrb[3].mxu0 }
  0xe1   :  { %v124_v17 = vmul.f32 1.442695, %v172_v12  ;;  %v173_v18 = vadd.f32 -5.0, %v89_v13 }
  0xe3   :  { %189 = vpow2.f32 %v124_v17  ;;  %v126_v19 = vmul.f32 1.442695, %v173_v18 }
  0xe5   :  { %191 = vpow2.f32 %v126_v19 }
  0xed   :  { %v190_v23 = vpop.eup %189 }
  0xee   :  { %v128_v24 = vmul.f32 %v190_v23, %v120_v22 }
  0xef   :  { %v192_v25 = vpop.eup %191 }
  0xf0   :  { %v131_v26 = vsel %vm130_vm6, %v128_v24, 0.0  ;;  %v129_v27 = vmul.f32 0.0, %v192_v25 }
  0xf1   :  { %142 = vadd.xlane.f32.xlu0 %v131_v26 }
  0xf2   :  { %v132_v28 = vsel %vm130_vm6, %v129_v27, 0.0 }
  0xf3   :  { %v133_v29 = vadd.f32 %v132_v28, %v131_v26 }
  0xf5   :  { %v134_v30 = vrot.slane %v133_v29, 4 }
  0xf7   :  { %v135_v31 = vadd.f32 %v134_v30, %v133_v29 }
  0xf9   :  { %v136_v32 = vrot.slane %v135_v31, 2 }
  0xfb   :  { %v137_v33 = vadd.f32 %v136_v32, %v135_v31 }
  0xfd   :  { %v138_v34 = vrot.slane %v137_v33, 1 }
  0xff   :  { %v139_v35 = vadd.f32 %v138_v34, %v137_v33 }
 0x101   :  { %141 = vst.msk [vmem:[%s257_s5] sm:$0x1] %vm140_vm7, %v139_v35 }
 0x17e   :  { %v143_v36 = vpop.xlane.xlu0 %142 }
 0x17f   :  { %193 = vlog2.f32 %v143_v36 }
 0x189   :  { %v194_v37 = vpop.eup %193 }
 0x18a   :  { %v151_v38 = vmul.f32 0.6931472, %v194_v37 }
 0x18c   :  { %v154_v39 = vmul.f32 0.5, %v151_v38 }
 0x18e   :  { %159 = vst.msk [vmem:[%s252_s4] sm:$0xff] %vm158_vm0, %v154_v39 }

</bundles_post_ra>
